<compile_context>
chip_gen: v7x
topology: tpu7x:2x2x1
jax: 0.10.0
libtpu: 0.0.40
codegen_flags: <defaults>
</compile_context>

<pallas_src>
import jax
import jax.numpy as jnp
from jax.experimental import pallas as pl
from jax.experimental.pallas import tpu as pltpu

TILE_M = 256  # tokens per grid step (big tile: amortizes per-step overhead)


def _onehot_gather(ids_ref, emb_ref):
    """MXU one-hot gather: (TILE_M, 1) ids + (V, D) table -> (TILE_M, D) rows."""
    vocab = emb_ref.shape[0]
    ids = jnp.clip(ids_ref[...], 0, vocab - 1)                         # (TILE_M, 1) int32
    cols = jax.lax.broadcasted_iota(jnp.int32, (ids.shape[0], vocab), 1)
    onehot = (cols == ids).astype(jnp.float32)                         # (TILE_M, V)
    return jnp.dot(onehot, emb_ref[...].astype(jnp.float32),
                   preferred_element_type=jnp.float32,
                   precision=jax.lax.Precision.HIGHEST)                # exact gather


def _embed_kernel(ids_ref, emb_ref, out_ref):
    out_ref[...] = _onehot_gather(ids_ref, emb_ref).astype(out_ref.dtype)


def _embed_dropout_kernel(ids_ref, emb_ref, mask_ref, out_ref):
    x = _onehot_gather(ids_ref, emb_ref)
    out_ref[...] = (x * mask_ref[...].astype(jnp.float32)).astype(out_ref.dtype)


def word_embedding_forward(word_inputs, emb_table, *, dropout_p=0.0,
                           dropout_rng=None, tile_m=TILE_M):
    """Forward of WordEmbedding (word path): embedding lookup + inverted dropout."""
    B, S = word_inputs.shape
    V, D = emb_table.shape
    n = B * S
    n_pad = tile_m * pl.cdiv(n, tile_m)               # pad tail instead of asserting

    ids = word_inputs.reshape(n).astype(jnp.int32)
    ids = jnp.pad(ids, (0, n_pad - n))                # pad with id 0 (valid, discarded later)
    ids2d = ids.reshape(n_pad, 1)

    grid = (n_pad // tile_m,)
    ids_spec = pl.BlockSpec((tile_m, 1), lambda i: (i, 0))
    emb_spec = pl.BlockSpec((V, D), lambda i: (0, 0))  # whole (small) table in VMEM
    out_spec = pl.BlockSpec((tile_m, D), lambda i: (i, 0))
    out_shape = jax.ShapeDtypeStruct((n_pad, D), emb_table.dtype)
    cparams = pltpu.CompilerParams(dimension_semantics=("parallel",))

    if dropout_p > 0.0:
        if dropout_rng is None:
            dropout_rng = jax.random.PRNGKey(0)
        keep = jax.random.bernoulli(dropout_rng, 1.0 - dropout_p, (n_pad, D))
        scale_mask = keep.astype(emb_table.dtype) * (1.0 / (1.0 - dropout_p))
        out_flat = pl.pallas_call(
            _embed_dropout_kernel,
            out_shape=out_shape,
            grid=grid,
            in_specs=[ids_spec, emb_spec,
                      pl.BlockSpec((tile_m, D), lambda i: (i, 0))],
            out_specs=out_spec,
            compiler_params=cparams,
        )(ids2d, emb_table, scale_mask)
    else:
        out_flat = pl.pallas_call(
            _embed_kernel,
            out_shape=out_shape,
            grid=grid,
            in_specs=[ids_spec, emb_spec],
            out_specs=out_spec,
            compiler_params=cparams,
        )(ids2d, emb_table)

    return out_flat[:n].reshape(B, S, D)


if __name__ == "__main__":
    # Small, module-consistent shapes: batch=2, sent_len=8, vocab=50, embedding_dim=32.
    B, S = 2, 8
    V, D = 50, 32
    dropout_p = 0.5

    key = jax.random.PRNGKey(0)
    k_emb, k_ids, k_drop = jax.random.split(key, 3)

    # random_embedding(): uniform(-scale, scale), scale = sqrt(3 / embedding_dim)
    scale = jnp.sqrt(3.0 / D)
    emb_table = jax.random.uniform(k_emb, (V, D), jnp.float32, minval=-scale, maxval=scale)
    word_inputs = jax.random.randint(k_ids, (B, S), 0, V, dtype=jnp.int32)

    ref = jnp.take(emb_table, word_inputs.reshape(-1), axis=0).reshape(B, S, D)

    # 1) Eval-mode check (dropout disabled) against a pure-JAX reference gather.
    out_eval = jax.block_until_ready(
        word_embedding_forward(word_inputs, emb_table, dropout_p=0.0))
    assert out_eval.shape == (B, S, D)
    assert jnp.allclose(out_eval, ref, atol=1e-5), "embedding gather mismatch"

    # 2) Training-mode run (in-kernel inverted dropout via precomputed scale mask).
    out_train = jax.block_until_ready(
        word_embedding_forward(word_inputs, emb_table, dropout_p=dropout_p,
                               dropout_rng=k_drop))
    assert out_train.shape == (B, S, D)
    kept = out_train != 0.0
    expected_train = jnp.where(kept, ref / (1.0 - dropout_p), 0.0)
    assert jnp.allclose(out_train, expected_train, atol=1e-4), "dropout scaling mismatch"
    assert bool(jnp.any(kept)) and bool(jnp.any(~kept)), "dropout mask degenerate"

    print("KERNEL_OK")
</pallas_src>

<mosaic_0001>
module attributes {stable_mosaic.version = 11 : i64} {
  func.func @_embed_kernel(%arg0: i32, %arg1: memref<256x1xi32, #tpu.memory_space<vmem>>, %arg2: memref<50x32xf32, #tpu.memory_space<vmem>>, %arg3: memref<256x32xf32, #tpu.memory_space<vmem>>) attributes {dimension_semantics = [#tpu.dimension_semantics<parallel>], iteration_bounds = array<i64: 1>, scalar_prefetch = 0 : i64, scratch_operands = 0 : i64, tpu.core_type = #tpu.core_type<tc>, window_params = [{transform_indices = @transform_0, window_bounds = array<i64: 256, 1>}, {pipeline_mode = #tpu.pipeline_mode<synchronous>, transform_indices = @transform_1, window_bounds = array<i64: 50, 32>}, {transform_indices = @transform_2, window_bounds = array<i64: 256, 32>}]} {
    %c0 = arith.constant 0 : index
    %c0_0 = arith.constant 0 : index
    %0 = vector.load %arg1[%c0, %c0_0] : memref<256x1xi32, #tpu.memory_space<vmem>>, vector<256x1xi32>
    %c0_i32 = arith.constant 0 : i32
    %c49_i32 = arith.constant 49 : i32
    %1 = vector.broadcast %c0_i32 : i32 to vector<256x1xi32>
    %2 = arith.maxsi %1, %0 : vector<256x1xi32>
    %3 = vector.broadcast %c49_i32 : i32 to vector<256x1xi32>
    %4 = arith.minsi %3, %2 : vector<256x1xi32>
    %5 = tpu.iota {dimensions = array<i32: 1>} : vector<256x50xi32>
    %6 = vector.broadcast %4 : vector<256x1xi32> to vector<256x50xi32>
    %7 = arith.cmpi eq, %5, %6 : vector<256x50xi32>
    %8 = arith.extui %7 : vector<256x50xi1> to vector<256x50xi32>
    %9 = arith.sitofp %8 : vector<256x50xi32> to vector<256x50xf32>
    %c0_1 = arith.constant 0 : index
    %c0_2 = arith.constant 0 : index
    %10 = vector.load %arg2[%c0_1, %c0_2] : memref<50x32xf32, #tpu.memory_space<vmem>>, vector<50x32xf32>
    %cst = arith.constant dense<0.000000e+00> : vector<256x32xf32>
    %11 = tpu.matmul %9, %10, %cst {dimension_numbers = #tpu.dot_dimension_numbers<[1], [0], [0], [1], [0, 0, 1, 1], [], []>, precision = #tpu.contract_precision<fp32>} : vector<256x50xf32>, vector<50x32xf32>, vector<256x32xf32> -> vector<256x32xf32>
    %c0_3 = arith.constant 0 : index
    %c0_4 = arith.constant 0 : index
    %12 = vector.load %arg3[%c0_3, %c0_4] : memref<256x32xf32, #tpu.memory_space<vmem>>, vector<256x32xf32>
    tpu.vector_store %arg3[%c0_3, %c0_4], %11 {strides = array<i32>} : memref<256x32xf32, #tpu.memory_space<vmem>>, vector<256x32xf32>,
    return
  }
  func.func @transform_0(%arg0: i32) -> (i32, i32) {
    %c0_i32 = arith.constant 0 : i32
    %c0_i32_0 = arith.constant 0 : i32
    return %arg0, %c0_i32 : i32, i32
  }
  func.func @transform_1(%arg0: i32) -> (i32, i32) {
    %c0_i32 = arith.constant 0 : i32
    %c0_i32_0 = arith.constant 0 : i32
    %c0_i32_1 = arith.constant 0 : i32
    return %c0_i32, %c0_i32_0 : i32, i32
  }
  func.func @transform_2(%arg0: i32) -> (i32, i32) {
    %c0_i32 = arith.constant 0 : i32
    %c0_i32_0 = arith.constant 0 : i32
    return %arg0, %c0_i32 : i32, i32
  }
}

</mosaic_0001>

<bundles_post_ra>
// kernel: tpu_custom_call.1
= control target key start
LH: loop header
LB: loop body
LE: loop exit
PB: predicated region body
PF: predicated region fallthrough
CT: control target
= control target key end

     0   :  { %v3337_v0 = vmov 0   ;;  %s4284_s0 = inlined_call_operand.vmem [shape: s32[256,1], index: 0, kind: input, shape index: {}]   ;;  %s4285_s1 = inlined_call_operand.vmem [shape: f32[50,32], index: 1, kind: input, shape index: {}]   ;;  %s4286_s2 = inlined_call_operand.vmem [shape: f32[256,32], index: 2, kind: output, shape index: {}]  }
   0x1   :  { %3336 = vset.pattern.permute.xlu1 %v3337_v0  ;;  %3335 = vset.pattern.permute.xlu0 %v3337_v0  ;;  %v13_v1 = vld [vmem:[%s4284_s0 + $0x10] sm:$0xff]  ;;  %v11_v2 = vld [vmem:[%s4284_s0] sm:$0xff]  ;;  %v14_v3 = vld [vmem:[%s4284_s0 + $0x18] sm:$0xff] }
   0x2   :  { %vm47_vm0 = vcmp.gt.s32.totalorder %v13_v1, 0  ;;  %vm43_vm1 = vcmp.gt.s32.totalorder %v11_v2, 0  ;;  %vm49_vm2 = vcmp.gt.s32.totalorder %v14_v3, 0  ;;  %v12_v4 = vld [vmem:[%s4284_s0 + $0x8] sm:$0xff]  ;;  %v15_v9 = vld [vmem:[%s4284_s0 + $0x20] sm:$0xff]  ;;  %v18_v10 = vld [vmem:[%s4284_s0 + $0x38] sm:$0xff] }
   0x3   :  { %v16_v5 = vld [vmem:[%s4284_s0 + $0x28] sm:$0xff]  ;;  %v48_v6 = vsel %vm47_vm0, %v13_v1, 0  ;;  %v44_v7 = vsel %vm43_vm1, %v11_v2, 0  ;;  %v50_v8 = vsel %vm49_vm2, %v14_v3, 0  ;;  %vm45_vm3 = vcmp.gt.s32.totalorder %v12_v4, 0  ;;  %v17_v12 = vld [vmem:[%s4284_s0 + $0x30] sm:$0xff] }
   0x4   :  { %vm111_vm4 = vcmp.lt.s32.totalorder %v48_v6, 49  ;;  %vm107_vm5 = vcmp.lt.s32.totalorder %v44_v7, 49  ;;  %vm113_vm6 = vcmp.lt.s32.totalorder %v50_v8, 49  ;;  %v46_v11 = vsel %vm45_vm3, %v12_v4, 0  ;;  %v20_v19 = vld [vmem:[%s4284_s0 + $0x48] sm:$0xff]  ;;  %v19_v20 = vld [vmem:[%s4284_s0 + $0x40] sm:$0xff] }
   0x5   :  { %v112_v13 = vsel %vm111_vm4, %v48_v6, 49  ;;  %v108_v14 = vsel %vm107_vm5, %v44_v7, 49  ;;  %vm109_vm7 = vcmp.lt.s32.totalorder %v46_v11, 49  ;;  %v114_v15 = vsel %vm113_vm6, %v50_v8, 49  ;;  %v22_v25 = vld [vmem:[%s4284_s0 + $0x58] sm:$0xff]  ;;  %v21_v26 = vld [vmem:[%s4284_s0 + $0x50] sm:$0xff] }
   0x6   :  { %180 = vperm.xlu1 %3336, %v112_v13   ;;  %174 = vperm.xlu0 %3335, %v108_v14   ;;  %vm53_vm8 = vcmp.gt.s32.totalorder %v16_v5, 0  ;;  %vm51_vm9 = vcmp.gt.s32.totalorder %v15_v9, 0  ;;  %vm57_vm10 = vcmp.gt.s32.totalorder %v18_v10, 0  ;;  %v110_v16 = vsel %vm109_vm7, %v46_v11, 49  ;;  %v24_v29 = vld [vmem:[%s4284_s0 + $0x68] sm:$0xff]  ;;  %v23_v30 = vld [vmem:[%s4284_s0 + $0x60] sm:$0xff] }
   0x7   :  { %v54_v17 = vsel %vm53_vm8, %v16_v5, 0  ;;  %v52_v18 = vsel %vm51_vm9, %v15_v9, 0  ;;  %vm55_vm11 = vcmp.gt.s32.totalorder %v17_v12, 0  ;;  %v58_v21 = vsel %vm57_vm10, %v18_v10, 0  ;;  %v26_v37 = vld [vmem:[%s4284_s0 + $0x78] sm:$0xff]  ;;  %v25_v38 = vld [vmem:[%s4284_s0 + $0x70] sm:$0xff] }
   0x8   :  { %vm117_vm12 = vcmp.lt.s32.totalorder %v54_v17, 49  ;;  %vm115_vm13 = vcmp.lt.s32.totalorder %v52_v18, 49  ;;  %v56_v22 = vsel %vm55_vm11, %v17_v12, 0  ;;  %vm61_vm14 = vcmp.gt.s32.totalorder %v20_v19, 0  ;;  %v28_v41 = vld [vmem:[%s4284_s0 + $0x88] sm:$0xff]  ;;  %v27_v42 = vld [vmem:[%s4284_s0 + $0x80] sm:$0xff] }
   0x9   :  { %vm59_vm15 = vcmp.gt.s32.totalorder %v19_v20, 0  ;;  %v118_v23 = vsel %vm117_vm12, %v54_v17, 49  ;;  %v116_v24 = vsel %vm115_vm13, %v52_v18, 49  ;;  %vm121_vm0 = vcmp.lt.s32.totalorder %v58_v21, 49  ;;  %v30_v43 = vld [vmem:[%s4284_s0 + $0x98] sm:$0xff]  ;;  %v29_v46 = vld [vmem:[%s4284_s0 + $0x90] sm:$0xff] }
   0xa   :  { %183 = vperm.xlu1 %3336, %v114_v15   ;;  %177 = vperm.xlu0 %3335, %v110_v16   ;;  %vm119_vm1 = vcmp.lt.s32.totalorder %v56_v22, 49  ;;  %v62_v27 = vsel %vm61_vm14, %v20_v19, 0  ;;  %v60_v28 = vsel %vm59_vm15, %v19_v20, 0  ;;  %vm65_vm2 = vcmp.gt.s32.totalorder %v22_v25, 0  ;;  %v32_v54 = vld [vmem:[%s4284_s0 + $0xa8] sm:$0xff]  ;;  %v31_v56 = vld [vmem:[%s4284_s0 + $0xa0] sm:$0xff] }
   0xb   :  { %vm63_vm3 = vcmp.gt.s32.totalorder %v21_v26, 0  ;;  %v122_v31 = vsel %vm121_vm0, %v58_v21, 49  ;;  %v120_v32 = vsel %vm119_vm1, %v56_v22, 49  ;;  %vm125_vm4 = vcmp.lt.s32.totalorder %v62_v27, 49  ;;  %v34_v59 = vld [vmem:[%s4284_s0 + $0xb8] sm:$0xff]  ;;  %v365_v60 = vld [vmem:[%s4285_s1] sm:$0xff] }
   0xc   :  { %vm123_vm5 = vcmp.lt.s32.totalorder %v60_v28, 49  ;;  %v66_v33 = vsel %vm65_vm2, %v22_v25, 0  ;;  %v64_v34 = vsel %vm63_vm3, %v21_v26, 0  ;;  %vm69_vm6 = vcmp.gt.s32.totalorder %v24_v29, 0  ;;  %v366_v61 = vld [vmem:[%s4285_s1 + $0x8] sm:$0xff]  ;;  %v367_v62 = vld [vmem:[%s4285_s1 + $0x10] sm:$0xff] }
   0xd   :  { %vm67_vm7 = vcmp.gt.s32.totalorder %v23_v30, 0  ;;  %v126_v35 = vsel %vm125_vm4, %v62_v27, 49  ;;  %v124_v36 = vsel %vm123_vm5, %v60_v28, 49  ;;  %vm129_vm8 = vcmp.lt.s32.totalorder %v66_v33, 49  ;;  %v368_v63 = vld [vmem:[%s4285_s1 + $0x18] sm:$0xff]  ;;  %v3438_v0 = vld [vmem:[%s4285_s1 + $0x20] sm:$0xff] }
   0xe   :  { %189 = vperm.xlu1 %3336, %v118_v23   ;;  %186 = vperm.xlu0 %3335, %v116_v24   ;;  %vm127_vm9 = vcmp.lt.s32.totalorder %v64_v34, 49  ;;  %v70_v39 = vsel %vm69_vm6, %v24_v29, 0  ;;  %v68_v40 = vsel %vm67_vm7, %v23_v30, 0  ;;  %vm73_vm10 = vcmp.gt.s32.totalorder %v26_v37, 0  ;;  %v3443_v4 = vld [vmem:[%s4285_s1 + $0x28] sm:$0xff]  ;;  %v33_v5 = vld [vmem:[%s4284_s0 + $0xb0] sm:$0xff] }
   0xf   :  { %vm71_vm11 = vcmp.gt.s32.totalorder %v25_v38, 0  ;;  %v130_v44 = vsel %vm129_vm8, %v66_v33, 49  ;;  %v128_v45 = vsel %vm127_vm9, %v64_v34, 49  ;;  %vm133_vm12 = vcmp.lt.s32.totalorder %v70_v39, 49  ;;  %v36_v20 = vld [vmem:[%s4284_s0 + $0xc8] sm:$0xff]  ;;  %v35_v21 = vld [vmem:[%s4284_s0 + $0xc0] sm:$0xff] }
  0x10   :  { %vm131_vm13 = vcmp.lt.s32.totalorder %v68_v40, 49  ;;  %vm77_vm14 = vcmp.gt.s32.totalorder %v28_v41, 0  ;;  %vm75_vm15 = vcmp.gt.s32.totalorder %v27_v42, 0  ;;  %vm81_vm0 = vcmp.gt.s32.totalorder %v30_v43, 0  ;;  %v371_v26 = vld [vmem:[%s4285_s1 + $0x30] sm:$0x3] }
  0x11   :  { %v74_v47 = vsel %vm73_vm10, %v26_v37, 0  ;;  %v72_v48 = vsel %vm71_vm11, %v25_v38, 0  ;;  %v134_v49 = vsel %vm133_vm12, %v70_v39, 49  ;;  %v132_v50 = vsel %vm131_vm13, %v68_v40, 49  ;;  %v38_v39 = vld [vmem:[%s4284_s0 + $0xd8] sm:$0xff]  ;;  %v37_v40 = vld [vmem:[%s4284_s0 + $0xd0] sm:$0xff] }
  0x12   :  { %195 = vperm.xlu1 %3336, %v122_v31   ;;  %192 = vperm.xlu0 %3335, %v120_v32   ;;  %v78_v51 = vsel %vm77_vm14, %v28_v41, 0  ;;  %v76_v52 = vsel %vm75_vm15, %v27_v42, 0  ;;  %v82_v53 = vsel %vm81_vm0, %v30_v43, 0  ;;  %vm79_vm1 = vcmp.gt.s32.totalorder %v29_v46, 0 }
  0x13   :  { %vm137_vm2 = vcmp.lt.s32.totalorder %v74_v47, 49  ;;  %vm135_vm3 = vcmp.lt.s32.totalorder %v72_v48, 49  ;;  %vm141_vm4 = vcmp.lt.s32.totalorder %v78_v51, 49  ;;  %vm139_vm5 = vcmp.lt.s32.totalorder %v76_v52, 49 }
  0x14   :  { %vm145_vm6 = vcmp.lt.s32.totalorder %v82_v53, 49  ;;  %v80_v55 = vsel %vm79_vm1, %v29_v46, 0  ;;  %v138_v57 = vsel %vm137_vm2, %v74_v47, 49  ;;  %v136_v58 = vsel %vm135_vm3, %v72_v48, 49 }
  0x15   :  { %vm85_vm7 = vcmp.gt.s32.totalorder %v32_v54, 0  ;;  %v142_v1 = vsel %vm141_vm4, %v78_v51, 49  ;;  %v140_v2 = vsel %vm139_vm5, %v76_v52, 49  ;;  %v146_v3 = vsel %vm145_vm6, %v82_v53, 49  ;;  %v40_v51 = vld [vmem:[%s4284_s0 + $0xe8] sm:$0xff]  ;;  %v39_v52 = vld [vmem:[%s4284_s0 + $0xe0] sm:$0xff] }
  0x16   :  { %201 = vperm.xlu1 %3336, %v126_v35   ;;  %198 = vperm.xlu0 %3335, %v124_v36   ;;  %vm143_vm8 = vcmp.lt.s32.totalorder %v80_v55, 49  ;;  %vm83_vm9 = vcmp.gt.s32.totalorder %v31_v56, 0  ;;  %vm89_vm10 = vcmp.gt.s32.totalorder %v34_v59, 0  ;;  %v474_v6 = vand.u32 4294901760, %v365_v60 }
  0x17   :  { %v477_v7 = vand.u32 4294901760, %v366_v61  ;;  %v86_v8 = vsel %vm85_vm7, %v32_v54, 0  ;;  %v480_v9 = vand.u32 4294901760, %v367_v62  ;;  %v483_v10 = vand.u32 4294901760, %v368_v63 }
  0x18   :  { %v486_v11 = vand.u32 4294901760, %v3438_v0  ;;  %v489_v13 = vand.u32 4294901760, %v3443_v4  ;;  %v3453_v14 = vsub.f32 %v365_v60, %v474_v6  ;;  %v84_v16 = vsel %vm83_vm9, %v31_v56, 0  ;;  %v41_v60 = vld [vmem:[%s4284_s0 + $0xf0] sm:$0xff] }
  0x19   :  { %v3450_v12 = vpack.c.bf16 %v477_v7, %v474_v6  ;;  %v3455_v15 = vsub.f32 %v366_v61, %v477_v7  ;;  %vm87_vm11 = vcmp.gt.s32.totalorder %v33_v5, 0  ;;  %v3457_v17 = vpack.c.bf16 %v483_v10, %v480_v9 }
  0x1a   :  { %207 = vperm.xlu1 %3336, %v130_v44   ;;  %204 = vperm.xlu0 %3335, %v128_v45   ;;  %v3459_v18 = vsub.f32 %v367_v62, %v480_v9  ;;  %v144_v19 = vsel %vm143_vm8, %v80_v55, 49  ;;  %v868_v22 = vand.u32 4294901760, %v3453_v14  ;;  %v3470_v24 = vsub.f32 %v368_v63, %v483_v10  ;;  %v42_v55 = vld [vmem:[%s4284_s0 + $0xf8] sm:$0xff] }
  0x1b   :  { %v875_v23 = vand.u32 4294901760, %v3455_v15  ;;  %vm149_vm12 = vcmp.lt.s32.totalorder %v86_v8, 49  ;;  %v90_v25 = vsel %vm89_vm10, %v34_v59, 0  ;;  %3138 = vmatprep.subr.bf16.mxu0 %v3450_v12  ;;  %3102 = vmatprep.subr.bf16.mxu1 %v3450_v12  ;;  %vm469_vm13 = vcmask 1041408  }
  0x1c   :  { %v882_v27 = vand.u32 4294901760, %v3459_v18  ;;  %vm147_vm14 = vcmp.lt.s32.totalorder %v84_v16, 49  ;;  %v88_v28 = vsel %vm87_vm11, %v33_v5, 0  ;;  %3140 = vmatpush3.bf16.msra.mxu0 %v3450_v12  ;;  %3104 = vmatpush3.bf16.msra.mxu1 %v3450_v12  ;;  %v3486_v29 = vpack.c.bf16 %v489_v13, %v486_v11 }
  0x1d   :  { %v889_v30 = vand.u32 4294901760, %v3470_v24  ;;  %vm93_vm15 = vcmp.gt.s32.totalorder %v36_v20, 0  ;;  %3142 = vmatprep.subr.bf16.mxu0 %v3457_v17  ;;  %3106 = vmatprep.subr.bf16.mxu1 %v3457_v17  ;;  %v869_v31 = vsub.f32 %v3453_v14, %v868_v22  ;;  %v876_v32 = vsub.f32 %v3455_v15, %v875_v23 }
  0x1e   :  { %213 = vperm.xlu1 %3336, %v134_v49   ;;  %210 = vperm.xlu0 %3335, %v132_v50   ;;  %v883_v33 = vsub.f32 %v3459_v18, %v882_v27  ;;  %vm91_vm0 = vcmp.gt.s32.totalorder %v35_v21, 0  ;;  %v3499_v34 = vsel %vm469_vm13, %v371_v26, 0  ;;  %v150_v37 = vsel %vm149_vm12, %v86_v8, 49 }
  0x1f   :  { %v890_v35 = vsub.f32 %v3470_v24, %v889_v30  ;;  %v3502_v36 = vpack.c.bf16 %v889_v30, %v882_v27  ;;  %v148_v38 = vsel %vm147_vm14, %v84_v16, 49  ;;  %vm153_vm1 = vcmp.lt.s32.totalorder %v90_v25, 49 }
  0x20   :  { %v884_v41 = vand.u32 4294901760, %v883_v33  ;;  %vm151_vm2 = vcmp.lt.s32.totalorder %v88_v28, 49  ;;  %v94_v42 = vsel %vm93_vm15, %v36_v20, 0  ;;  %3144 = vmatpush3.bf16.msra.mxu0 %v3457_v17  ;;  %3108 = vmatpush3.bf16.msra.mxu1 %v3457_v17  ;;  %v92_v44 = vsel %vm91_vm0, %v35_v21, 0 }
  0x21   :  { %v891_v43 = vand.u32 4294901760, %v890_v35  ;;  %3146 = vmatprep.subr.bf16.mxu0 %v3486_v29  ;;  %3110 = vmatprep.subr.bf16.mxu1 %v3486_v29  ;;  %v3518_v45 = vand.u32 4294901760, %v3499_v34  ;;  %v870_v46 = vand.u32 4294901760, %v869_v31  ;;  %v877_v47 = vand.u32 4294901760, %v876_v32 }
  0x22   :  { %219 = vperm.xlu1 %3336, %v138_v57   ;;  %216 = vperm.xlu0 %3335, %v136_v58   ;;  %vm97_vm3 = vcmp.gt.s32.totalorder %v38_v39, 0  ;;  %vm95_vm4 = vcmp.gt.s32.totalorder %v37_v40, 0  ;;  %v154_v49 = vsel %vm153_vm1, %v90_v25, 49  ;;  %v152_v50 = vsel %vm151_vm2, %v88_v28, 49 }
  0x23   :  { %v3520_v48 = vpack.c.bf16 %v891_v43, %v884_v41  ;;  %vm157_vm5 = vcmp.lt.s32.totalorder %v94_v42, 49  ;;  %vm155_vm6 = vcmp.lt.s32.totalorder %v92_v44, 49  ;;  %v98_v53 = vsel %vm97_vm3, %v38_v39, 0 }
  0x24   :  { %3148 = vmatpush3.bf16.msra.mxu0 %v3486_v29  ;;  %3112 = vmatpush3.bf16.msra.mxu1 %v3486_v29  ;;  %v96_v54 = vsel %vm95_vm4, %v37_v40, 0  ;;  %v3537_v56 = vpack.c.bf16 %v877_v47, %v870_v46  ;;  %v3543_v57 = vpack.c.bf16 %v875_v23, %v868_v22  ;;  %vm101_vm7 = vcmp.gt.s32.totalorder %v40_v51, 0 }
  0x25   :  { %2927 = vmatprep.subr.mxu0 %v3518_v45  ;;  %2741 = vmatprep.subr.mxu1 %v3518_v45  ;;  %vm99_vm8 = vcmp.gt.s32.totalorder %v39_v52, 0  ;;  %v158_v58 = vsel %vm157_vm5, %v94_v42, 49  ;;  %v156_v59 = vsel %vm155_vm6, %v92_v44, 49  ;;  %vm161_vm9 = vcmp.lt.s32.totalorder %v98_v53, 49 }
  0x26   :  { %225 = vperm.xlu1 %3336, %v142_v1   ;;  %222 = vperm.xlu0 %3335, %v140_v2   ;;  %vm159_vm10 = vcmp.lt.s32.totalorder %v96_v54, 49  ;;  %vm105_vm11 = vcmp.gt.s32.totalorder %v42_v55, 0  ;;  %v102_v61 = vsel %vm101_vm7, %v40_v51, 0  ;;  %v100_v62 = vsel %vm99_vm8, %v39_v52, 0 }
  0x27   :  { %v895_v63 = vsub.f32 %v3438_v0, %v486_v11  ;;  %v902_v1 = vsub.f32 %v3443_v4, %v489_v13  ;;  %vm103_vm12 = vcmp.gt.s32.totalorder %v41_v60, 0  ;;  %v162_v2 = vsel %vm161_vm9, %v98_v53, 49 }
  0x28   :  { %2928 = vmatpush3.msra.mxu0 %v3518_v45  ;;  %2742 = vmatpush3.msra.mxu1 %v3518_v45  ;;  %vm165_vm13 = vcmp.lt.s32.totalorder %v102_v61, 49  ;;  %vm163_vm14 = vcmp.lt.s32.totalorder %v100_v62, 49  ;;  %v106_v7 = vsel %vm105_vm11, %v42_v55, 0  ;;  %v104_v8 = vsel %vm103_vm12, %v41_v60, 0 }
  0x29   :  { %3114 = vmatprep.subr.bf16.mxu1 %v3537_v56  ;;  %3150 = vmatprep.subr.bf16.mxu0 %v3543_v57  ;;  %v896_v5 = vand.u32 4294901760, %v895_v63  ;;  %v903_v6 = vand.u32 4294901760, %v902_v1  ;;  %v166_v0 = vsel %vm165_vm13, %v102_v61, 49  ;;  %v164_v4 = vsel %vm163_vm14, %v100_v62, 49 }
  0x2a   :  { %231 = vperm.xlu1 %3336, %v146_v3   ;;  %228 = vperm.xlu0 %3335, %v144_v19   ;;  %v160_v3 = vsel %vm159_vm10, %v96_v54, 49  ;;  %vm169_vm15 = vcmp.lt.s32.totalorder %v106_v7, 49  ;;  %vm167_vm0 = vcmp.lt.s32.totalorder %v104_v8, 49  ;;  %v3565_v22 = vpack.c.bf16 %v3455_v15, %v3453_v14 }
  0x2b   :  { %v897_v9 = vsub.f32 %v895_v63, %v896_v5  ;;  %v904_v10 = vsub.f32 %v902_v1, %v903_v6  ;;  %v3559_v16 = vpack.c.bf16 %v903_v6, %v896_v5  ;;  %v170_v20 = vsel %vm169_vm15, %v106_v7, 49 }
  0x2c   :  { %v168_v21 = vsel %vm167_vm0, %v104_v8, 49  ;;  %v3569_v23 = vpack.c.bf16 %v3470_v24, %v3459_v18  ;;  %v3571_v25 = vpack.c.bf16 %v902_v1, %v895_v63  ;;  %v171_v26 = vlaneseq }
  0x2d   :  { %v898_v11 = vand.u32 4294901760, %v897_v9  ;;  %v905_v13 = vand.u32 4294901760, %v904_v10  ;;  %vm372_vm1 = vcmask 408576   ;;  %v4287_v31 = vmov 0.0  }
  0x2e   :  { %237 = vperm.xlu1 %3336, %v150_v37   ;;  %234 = vperm.xlu0 %3335, %v148_v38   ;;  %v3573_v27 = vand.u32 127, %v171_v26  ;;  %v3614_v51 = vsub.f32 %v3499_v34, %v3518_v45 }
  0x2f   :  { %v3561_v19 = vpack.c.bf16 %v905_v13, %v898_v11 }
  0x30   :  { %v3639_v5 = vand.u32 4294901760, %v3614_v51 }
  0x32   :  { %243 = vperm.xlu1 %3336, %v154_v49   ;;  %240 = vperm.xlu0 %3335, %v152_v50  }
  0x36   :  { %249 = vperm.xlu1 %3336, %v158_v58   ;;  %246 = vperm.xlu0 %3335, %v156_v59  }
  0x3a   :  { %255 = vperm.xlu1 %3336, %v162_v2   ;;  %252 = vperm.xlu0 %3335, %v160_v3  }
  0x3e   :  { %261 = vperm.xlu1 %3336, %v166_v0   ;;  %258 = vperm.xlu0 %3335, %v164_v4  }
  0x42   :  { %267 = vperm.xlu1 %3336, %v170_v20   ;;  %264 = vperm.xlu0 %3335, %v168_v21  }
  0x85   :  { %v181_v28 = vpop.permute.xlu1 %180  ;;  %v175_v30 = vpop.permute.xlu0 %174 }
  0x86   :  { %vm271_vm2 = vcmp.eq.s32.totalorder %v3573_v27, %v181_v28  ;;  %vm269_vm3 = vcmp.eq.s32.totalorder %v3573_v27, %v175_v30 }
  0x87   :  { %v3578_v14 = vsel %vm271_vm2, 1.0, %v4287_v31  ;;  %v3581_v15 = vsel %vm269_vm3, 1.0, %v4287_v31 }
  0x88   :  { %v380_v18 = vsel %vm372_vm1, %v3578_v14, 0  ;;  %v374_v24 = vsel %vm372_vm1, %v3581_v15, 0 }
  0x89   :  { %v3587_v32 = vsub.f32 %v380_v18, %v380_v18  ;;  %v3589_v33 = vsub.f32 %v374_v24, %v374_v24  ;;  %v184_v35 = vpop.permute.xlu1 %183  ;;  %v178_v37 = vpop.permute.xlu0 %177 }
  0x8a   :  { %vm272_vm4 = vcmp.eq.s32.totalorder %v3573_v27, %v184_v35  ;;  %vm270_vm5 = vcmp.eq.s32.totalorder %v3573_v27, %v178_v37 }
  0x8b   :  { %v3594_v38 = vsel %vm272_vm4, 1.0, %v4287_v31  ;;  %v3597_v39 = vsel %vm270_vm5, 1.0, %v4287_v31  ;;  %v547_v40 = vand.u32 4294901760, %v3589_v33  ;;  %v567_v43 = vand.u32 4294901760, %v3587_v32 }
  0x8c   :  { %v383_v41 = vsel %vm372_vm1, %v3594_v38, 0  ;;  %v377_v42 = vsel %vm372_vm1, %v3597_v39, 0 }
  0x8d   :  { %v3605_v44 = vsub.f32 %v383_v41, %v383_v41  ;;  %v3607_v46 = vsub.f32 %v377_v42, %v377_v42  ;;  %v190_v47 = vpop.permute.xlu1 %189  ;;  %2929 = vmatprep.mubr.f32.mxu0 %v547_v40  ;;  %v187_v49 = vpop.permute.xlu0 %186  ;;  %v548_v50 = vsub.f32 %v3589_v33, %v547_v40  ;;  %v568_v34 = vsub.f32 %v3587_v32, %v567_v43 }
  0x8e   :  { %vm274_vm6 = vcmp.eq.s32.totalorder %v3573_v27, %v190_v47  ;;  %vm273_vm7 = vcmp.eq.s32.totalorder %v3573_v27, %v187_v49  ;;  %v911_v42 = vsub.f32 %v3614_v51, %v3639_v5 }
  0x8f   :  { %v3617_v52 = vsel %vm274_vm6, 1.0, %v4287_v31  ;;  %v3620_v53 = vsel %vm273_vm7, 1.0, %v4287_v31  ;;  %v549_v54 = vand.u32 4294901760, %v548_v50  ;;  %v557_v55 = vand.u32 4294901760, %v3607_v46 }
  0x90   :  { %v389_v58 = vsel %vm372_vm1, %v3617_v52, 0  ;;  %v386_v59 = vsel %vm372_vm1, %v3620_v53, 0  ;;  %v577_v60 = vand.u32 4294901760, %v3605_v44  ;;  %v569_v0 = vand.u32 4294901760, %v568_v34 }
  0x91   :  { %v3629_v61 = vsub.f32 %v389_v58, %v389_v58  ;;  %v3631_v62 = vsub.f32 %v386_v59, %v386_v59  ;;  %v196_v63 = vpop.permute.xlu1 %195  ;;  %2743 = vmatprep.mubr.f32.mxu1 %v549_v54  ;;  %2930 = vmatmul.mubr.f32.vlgmr.msra.gmra.mrb[0].mxu0 %v557_v55  ;;  %v193_v1 = vpop.permute.xlu0 %192  ;;  %v558_v2 = vsub.f32 %v3607_v46, %v557_v55 }
  0x92   :  { %vm276_vm8 = vcmp.eq.s32.totalorder %v3573_v27, %v196_v63  ;;  %vm275_vm9 = vcmp.eq.s32.totalorder %v3573_v27, %v193_v1  ;;  %2932 = vmatprep.mubr.f32.mxu0 %v567_v43  ;;  %3152 = vmatpush3.bf16.msra.mxu0 %v3543_v57  ;;  %v578_v3 = vsub.f32 %v3605_v44, %v577_v60 }
  0x93   :  { %v3642_v6 = vsel %vm276_vm8, 1.0, %v4287_v31  ;;  %v3645_v7 = vsel %vm275_vm9, 1.0, %v4287_v31  ;;  %v559_v8 = vand.u32 4294901760, %v558_v2  ;;  %v587_v9 = vand.u32 4294901760, %v3631_v62  ;;  %3154 = vmatprep.subr.bf16.mxu0 %v3502_v36 }
  0x94   :  { %v395_v10 = vsel %vm372_vm1, %v3642_v6, 0  ;;  %v392_v57 = vsel %vm372_vm1, %v3645_v7, 0  ;;  %v597_v4 = vand.u32 4294901760, %v3629_v61  ;;  %v579_v28 = vand.u32 4294901760, %v578_v3 }
  0x95   :  { %v3654_v11 = vsub.f32 %v395_v10, %v395_v10  ;;  %v3656_v13 = vsub.f32 %v392_v57, %v392_v57  ;;  %v202_v20 = vpop.permute.xlu1 %201  ;;  %2744 = vmatmul.mubr.f32.vlgmr.msra.gmra.mrb[0].mxu1 %v559_v8  ;;  %2933 = vmatmul.mubr.f32.gmra.mrb[2].mxu0 %v577_v60  ;;  %v199_v21 = vpop.permute.xlu0 %198  ;;  %v588_v26 = vsub.f32 %v3631_v62, %v587_v9  ;;  %v912_v3 = vand.u32 4294901760, %v911_v42 }
  0x96   :  { %vm278_vm10 = vcmp.eq.s32.totalorder %v3573_v27, %v202_v20  ;;  %3116 = vmatpush3.bf16.msra.mxu1 %v3537_v56  ;;  %vm277_vm11 = vcmp.eq.s32.totalorder %v3573_v27, %v199_v21  ;;  %2746 = vmatprep.mubr.f32.mxu1 %v569_v0  ;;  %v598_v30 = vsub.f32 %v3629_v61, %v597_v4 }
  0x97   :  { %4311 = vst [vmem:[#allocation2_spill] sm:$0xff] %v3654_v11  ;;  %4312 = vst [vmem:[#allocation3_spill] sm:$0xff] %v3656_v13  ;;  %v3664_v18 = vsel %vm278_vm10, 1.0, %v4287_v31  ;;  %v3667_v24 = vsel %vm277_vm11, 1.0, %v4287_v31  ;;  %2935 = vmatprep.mubr.f32.mxu0 %v587_v9  ;;  %v589_v35 = vand.u32 4294901760, %v588_v26  ;;  %v607_v37 = vand.u32 4294901760, %v3656_v13  ;;  %3118 = vmatprep.subr.bf16.mxu1 %v3520_v48 }
  0x98   :  { %v401_v56 = vsel %vm372_vm1, %v3664_v18, 0  ;;  %v398_v40 = vsel %vm372_vm1, %v3667_v24, 0  ;;  %v617_v41 = vand.u32 4294901760, %v3654_v11  ;;  %3156 = vmatpush3.bf16.msra.mxu0 %v3502_v36  ;;  %v599_v36 = vand.u32 4294901760, %v598_v30 }
  0x99   :  { %v3679_v43 = vsub.f32 %v401_v56, %v401_v56  ;;  %v3681_v47 = vsub.f32 %v398_v40, %v398_v40  ;;  %v208_v49 = vpop.permute.xlu1 %207  ;;  %2747 = vmatmul.mubr.f32.gmra.mrb[2].mxu1 %v579_v28  ;;  %2936 = vmatmul.mubr.f32.gmra.mrb[4].mxu0 %v597_v4  ;;  %v205_v50 = vpop.permute.xlu0 %204  ;;  %v608_v54 = vsub.f32 %v3656_v13, %v607_v37 }
  0x9a   :  { %vm280_vm12 = vcmp.eq.s32.totalorder %v3573_v27, %v208_v49  ;;  %vm279_vm13 = vcmp.eq.s32.totalorder %v3573_v27, %v205_v50  ;;  %2749 = vmatprep.mubr.f32.mxu1 %v589_v35  ;;  %2938 = vmatprep.mubr.f32.mxu0 %v607_v37  ;;  %v618_v55 = vsub.f32 %v3654_v11, %v617_v41 }
  0x9b   :  { %4313 = vst [vmem:[#allocation4_spill] sm:$0xff] %v3679_v43  ;;  %4314 = vst [vmem:[#allocation5_spill] sm:$0xff] %v3681_v47  ;;  %v3688_v58 = vsel %vm280_vm12, 1.0, %v4287_v31  ;;  %v3691_v59 = vsel %vm279_vm13, 1.0, %v4287_v31  ;;  %v609_v60 = vand.u32 4294901760, %v608_v54  ;;  %v627_v34 = vand.u32 4294901760, %v3681_v47  ;;  %3120 = vmatpush3.bf16.msra.mxu1 %v3520_v48  ;;  %3158 = vmatprep.subr.bf16.mxu0 %v3559_v16 }
  0x9c   :  { %v407_v63 = vsel %vm372_vm1, %v3688_v58, 0  ;;  %v404_v1 = vsel %vm372_vm1, %v3691_v59, 0  ;;  %v637_v2 = vand.u32 4294901760, %v3679_v43  ;;  %3122 = vmatprep.subr.bf16.mxu1 %v3561_v19  ;;  %3160 = vmatpush3.bf16.msra.mxu0 %v3559_v16  ;;  %v619_v0 = vand.u32 4294901760, %v618_v55 }
  0x9d   :  { %v3703_v8 = vsub.f32 %v407_v63, %v407_v63  ;;  %v3705_v9 = vsub.f32 %v404_v1, %v404_v1  ;;  %v214_v48 = vpop.permute.xlu1 %213  ;;  %2750 = vmatmul.mubr.f32.gmra.mrb[4].mxu1 %v599_v36  ;;  %2939 = vmatmul.mubr.f32.gmra.mrb[6].mxu0 %v617_v41  ;;  %v211_v10 = vpop.permute.xlu0 %210  ;;  %v628_v57 = vsub.f32 %v3681_v47, %v627_v34 }
  0x9e   :  { %vm282_vm14 = vcmp.eq.s32.totalorder %v3573_v27, %v214_v48  ;;  %vm281_vm15 = vcmp.eq.s32.totalorder %v3573_v27, %v211_v10  ;;  %2752 = vmatprep.mubr.f32.mxu1 %v609_v60  ;;  %2941 = vmatprep.mubr.f32.mxu0 %v627_v34  ;;  %v638_v16 = vsub.f32 %v3679_v43, %v637_v2 }
  0x9f   :  { %4315 = vst [vmem:[#allocation6_spill] sm:$0xff] %v3703_v8  ;;  %4316 = vst [vmem:[#allocation7_spill] sm:$0xff] %v3705_v9  ;;  %v3712_v4 = vsel %vm282_vm14, 1.0, %v4287_v31  ;;  %v3715_v20 = vsel %vm281_vm15, 1.0, %v4287_v31  ;;  %v629_v21 = vand.u32 4294901760, %v628_v57  ;;  %v647_v26 = vand.u32 4294901760, %v3705_v9  ;;  %3124 = vmatpush3.bf16.msra.mxu1 %v3561_v19  ;;  %2989 = vmatprep.subr.mxu0 %v3639_v5 }
  0xa0   :  { %v413_v28 = vsel %vm372_vm1, %v3712_v4, 0  ;;  %v410_v30 = vsel %vm372_vm1, %v3715_v20, 0  ;;  %v657_v35 = vand.u32 4294901760, %v3703_v8  ;;  %2803 = vmatprep.subr.mxu1 %v912_v3  ;;  %2990 = vmatpush3.msra.mxu0 %v3639_v5  ;;  %v639_v42 = vand.u32 4294901760, %v638_v16 }
  0xa1   :  { %v3726_v37 = vsub.f32 %v413_v28, %v413_v28  ;;  %v3728_v56 = vsub.f32 %v410_v30, %v410_v30  ;;  %v220_v40 = vpop.permute.xlu1 %219  ;;  %2753 = vmatmul.mubr.f32.gmra.mrb[6].mxu1 %v619_v0  ;;  %2942 = vmatmul.mubr.f32.gmra.mrb[8].mxu0 %v637_v2  ;;  %v217_v19 = vpop.permute.xlu0 %216  ;;  %v648_v41 = vsub.f32 %v3705_v9, %v647_v26 }
  0xa2   :  { %vm284_vm0 = vcmp.eq.s32.totalorder %v3573_v27, %v220_v40  ;;  %vm283_vm2 = vcmp.eq.s32.totalorder %v3573_v27, %v217_v19  ;;  %2755 = vmatprep.mubr.f32.mxu1 %v629_v21  ;;  %2944 = vmatprep.mubr.f32.mxu0 %v647_v26  ;;  %v658_v49 = vsub.f32 %v3703_v8, %v657_v35 }
  0xa3   :  { %4317 = vst [vmem:[#allocation8_spill] sm:$0xff] %v3726_v37  ;;  %4318 = vst [vmem:[#allocation9_spill] sm:$0xff] %v3728_v56  ;;  %v3735_v5 = vsel %vm284_vm0, 1.0, %v4287_v31  ;;  %v3738_v50 = vsel %vm283_vm2, 1.0, %v4287_v31  ;;  %v649_v54 = vand.u32 4294901760, %v648_v41  ;;  %v667_v36 = vand.u32 4294901760, %v3728_v56  ;;  %2804 = vmatpush3.msra.mxu1 %v912_v3  ;;  %3162 = vmatprep.subr.bf16.mxu0 %v3450_v12 }
  0xa4   :  { %v419_v55 = vsel %vm372_vm1, %v3735_v5, 0  ;;  %v416_v60 = vsel %vm372_vm1, %v3738_v50, 0  ;;  %v677_v34 = vand.u32 4294901760, %v3726_v37  ;;  %3126 = vmatprep.subr.bf16.mxu1 %v3565_v22  ;;  %v659_v10 = vand.u32 4294901760, %v658_v49 }
  0xa5   :  { %v3748_v63 = vsub.f32 %v419_v55, %v419_v55  ;;  %v3750_v1 = vsub.f32 %v416_v60, %v416_v60  ;;  %v226_v2 = vpop.permute.xlu1 %225  ;;  %2756 = vmatmul.mubr.f32.gmra.mrb[8].mxu1 %v639_v42  ;;  %2945 = vmatmul.mubr.f32.gmra.mrb[10].mxu0 %v657_v35  ;;  %v223_v3 = vpop.permute.xlu0 %222  ;;  %v668_v48 = vsub.f32 %v3728_v56, %v667_v36 }
  0xa6   :  { %vm286_vm3 = vcmp.eq.s32.totalorder %v3573_v27, %v226_v2  ;;  %vm285_vm4 = vcmp.eq.s32.totalorder %v3573_v27, %v223_v3  ;;  %2758 = vmatprep.mubr.f32.mxu1 %v649_v54  ;;  %2947 = vmatprep.mubr.f32.mxu0 %v667_v36  ;;  %v678_v57 = vsub.f32 %v3726_v37, %v677_v34 }
  0xa7   :  { %4319 = vst [vmem:[#allocation10_spill] sm:$0xff] %v3748_v63  ;;  %4320 = vst [vmem:[#allocation11_spill] sm:$0xff] %v3750_v1  ;;  %v3757_v0 = vsel %vm286_vm3, 1.0, %v4287_v31  ;;  %v3760_v16 = vsel %vm285_vm4, 1.0, %v4287_v31  ;;  %v669_v21 = vand.u32 4294901760, %v668_v48  ;;  %v687_v26 = vand.u32 4294901760, %v3750_v1 }
  0xa8   :  { %v425_v28 = vsel %vm372_vm1, %v3757_v0, 0  ;;  %v422_v30 = vsel %vm372_vm1, %v3760_v16, 0  ;;  %v697_v35 = vand.u32 4294901760, %v3748_v63  ;;  %v679_v54 = vand.u32 4294901760, %v678_v57 }
  0xa9   :  { %v3768_v40 = vsub.f32 %v425_v28, %v425_v28  ;;  %v3770_v19 = vsub.f32 %v422_v30, %v422_v30  ;;  %v232_v41 = vpop.permute.xlu1 %231  ;;  %2759 = vmatmul.mubr.f32.gmra.mrb[10].mxu1 %v659_v10  ;;  %2948 = vmatmul.mubr.f32.gmra.mrb[12].mxu0 %v677_v34  ;;  %v229_v42 = vpop.permute.xlu0 %228  ;;  %v688_v49 = vsub.f32 %v3750_v1, %v687_v26  ;;  %vm2330_vm4 = vcmask 261120  }
  0xaa   :  { %vm288_vm5 = vcmp.eq.s32.totalorder %v3573_v27, %v232_v41  ;;  %vm287_vm6 = vcmp.eq.s32.totalorder %v3573_v27, %v229_v42  ;;  %2761 = vmatprep.mubr.f32.mxu1 %v669_v21  ;;  %2950 = vmatprep.mubr.f32.mxu0 %v687_v26  ;;  %v698_v36 = vsub.f32 %v3748_v63, %v697_v35  ;;  %v4327_v63 = vmov 0.0  }
  0xab   :  { %4321 = vst [vmem:[#allocation12_spill] sm:$0xff] %v3768_v40  ;;  %4322 = vst [vmem:[#allocation13_spill] sm:$0xff] %v3770_v19  ;;  %v3777_v55 = vsel %vm288_vm5, 1.0, %v4287_v31  ;;  %v3780_v60 = vsel %vm287_vm6, 1.0, %v4287_v31  ;;  %v689_v2 = vand.u32 4294901760, %v688_v49  ;;  %v707_v34 = vand.u32 4294901760, %v3770_v19 }
  0xac   :  { %v431_v3 = vsel %vm372_vm1, %v3777_v55, 0  ;;  %v428_v48 = vsel %vm372_vm1, %v3780_v60, 0  ;;  %v717_v10 = vand.u32 4294901760, %v3768_v40  ;;  %v699_v41 = vand.u32 4294901760, %v698_v36 }
  0xad   :  { %v3788_v57 = vsub.f32 %v431_v3, %v431_v3  ;;  %v3790_v21 = vsub.f32 %v428_v48, %v428_v48  ;;  %v238_v26 = vpop.permute.xlu1 %237  ;;  %2762 = vmatmul.mubr.f32.gmra.mrb[12].mxu1 %v679_v54  ;;  %2951 = vmatmul.mubr.f32.gmra.mrb[14].mxu0 %v697_v35  ;;  %v235_v28 = vpop.permute.xlu0 %234  ;;  %v708_v30 = vsub.f32 %v3770_v19, %v707_v34 }
  0xae   :  { %vm290_vm7 = vcmp.eq.s32.totalorder %v3573_v27, %v238_v26  ;;  %vm289_vm8 = vcmp.eq.s32.totalorder %v3573_v27, %v235_v28  ;;  %2764 = vmatprep.mubr.f32.mxu1 %v689_v2  ;;  %2953 = vmatprep.mubr.f32.mxu0 %v707_v34  ;;  %v718_v42 = vsub.f32 %v3768_v40, %v717_v10 }
  0xaf   :  { %4323 = vst [vmem:[#allocation14_spill] sm:$0xff] %v3788_v57  ;;  %4324 = vst [vmem:[#allocation15_spill] sm:$0xff] %v3790_v21  ;;  %v3797_v49 = vsel %vm290_vm7, 1.0, %v4287_v31  ;;  %v3800_v3 = vsel %vm289_vm8, 1.0, %v4287_v31  ;;  %v709_v54 = vand.u32 4294901760, %v708_v30  ;;  %v727_v35 = vand.u32 4294901760, %v3790_v21 }
  0xb0   :  { %v437_v48 = vsel %vm372_vm1, %v3797_v49, 0  ;;  %v434_v26 = vsel %vm372_vm1, %v3800_v3, 0  ;;  %v737_v2 = vand.u32 4294901760, %v3788_v57  ;;  %v719_v40 = vand.u32 4294901760, %v718_v42 }
  0xb1   :  { %v3808_v36 = vsub.f32 %v437_v48, %v437_v48  ;;  %v3810_v34 = vsub.f32 %v434_v26, %v434_v26  ;;  %v244_v28 = vpop.permute.xlu1 %243  ;;  %2765 = vmatmul.mubr.f32.gmra.mrb[14].mxu1 %v699_v41  ;;  %2954 = vmatmul.mubr.f32.gmra.mrb[16].mxu0 %v717_v10  ;;  %v241_v31 = vpop.permute.xlu0 %240  ;;  %v728_v30 = vsub.f32 %v3790_v21, %v727_v35 }
  0xb2   :  { %vm292_vm9 = vcmp.eq.s32.totalorder %v3573_v27, %v244_v28  ;;  %vm291_vm10 = vcmp.eq.s32.totalorder %v3573_v27, %v241_v31  ;;  %2767 = vmatprep.mubr.f32.mxu1 %v709_v54  ;;  %2956 = vmatprep.mubr.f32.mxu0 %v727_v35  ;;  %v738_v19 = vsub.f32 %v3788_v57, %v737_v2 }
  0xb3   :  { %4325 = vst [vmem:[#allocation16_spill] sm:$0xff] %v3808_v36  ;;  %4326 = vst [vmem:[#allocation17_spill] sm:$0xff] %v3810_v34  ;;  %v3817_v48 = vsel %vm292_vm9, 1.0, %v4327_v63  ;;  %v3820_v26 = vsel %vm291_vm10, 1.0, %v4327_v63  ;;  %v729_v41 = vand.u32 4294901760, %v728_v30  ;;  %v747_v10 = vand.u32 4294901760, %v3810_v34 }
  0xb4   :  { %v443_v21 = vsel %vm372_vm1, %v3817_v48, 0  ;;  %v440_v31 = vsel %vm372_vm1, %v3820_v26, 0  ;;  %v757_v54 = vand.u32 4294901760, %v3808_v36  ;;  %v739_v1 = vand.u32 4294901760, %v738_v19 }
  0xb5   :  { %v3828_v42 = vsub.f32 %v443_v21, %v443_v21  ;;  %v3830_v35 = vsub.f32 %v440_v31, %v440_v31  ;;  %v250_v28 = vpop.permute.xlu1 %249  ;;  %2768 = vmatmul.mubr.f32.gmra.mrb[16].mxu1 %v719_v40  ;;  %2957 = vmatmul.mubr.f32.gmra.mrb[18].mxu0 %v737_v2  ;;  %v247_v57 = vpop.permute.xlu0 %246  ;;  %v748_v30 = vsub.f32 %v3810_v34, %v747_v10 }
  0xb6   :  { %vm294_vm11 = vcmp.eq.s32.totalorder %v3573_v27, %v250_v28  ;;  %vm293_vm12 = vcmp.eq.s32.totalorder %v3573_v27, %v247_v57  ;;  %2770 = vmatprep.mubr.f32.mxu1 %v729_v41  ;;  %2959 = vmatprep.mubr.f32.mxu0 %v747_v10  ;;  %v758_v37 = vsub.f32 %v3808_v36, %v757_v54 }
  0xb7   :  { %4328 = vst [vmem:[#allocation18_spill] sm:$0xff] %v3828_v42  ;;  %4329 = vst [vmem:[#allocation19_spill] sm:$0xff] %v3830_v35  ;;  %v3837_v21 = vsel %vm294_vm11, 1.0, %v4327_v63  ;;  %v3840_v31 = vsel %vm293_vm12, 1.0, %v4327_v63  ;;  %v749_v40 = vand.u32 4294901760, %v748_v30  ;;  %v767_v2 = vand.u32 4294901760, %v3830_v35 }
  0xb8   :  { %v449_v34 = vsel %vm372_vm1, %v3837_v21, 0  ;;  %v446_v57 = vsel %vm372_vm1, %v3840_v31, 0  ;;  %v777_v41 = vand.u32 4294901760, %v3828_v42  ;;  %v759_v56 = vand.u32 4294901760, %v758_v37 }
  0xb9   :  { %v3848_v19 = vsub.f32 %v449_v34, %v449_v34  ;;  %v3850_v10 = vsub.f32 %v446_v57, %v446_v57  ;;  %v256_v28 = vpop.permute.xlu1 %255  ;;  %2771 = vmatmul.mubr.f32.gmra.mrb[18].mxu1 %v739_v1  ;;  %2960 = vmatmul.mubr.f32.gmra.mrb[20].mxu0 %v757_v54  ;;  %v253_v36 = vpop.permute.xlu0 %252  ;;  %v768_v30 = vsub.f32 %v3830_v35, %v767_v2 }
  0xba   :  { %vm296_vm13 = vcmp.eq.s32.totalorder %v3573_v27, %v256_v28  ;;  %vm295_vm14 = vcmp.eq.s32.totalorder %v3573_v27, %v253_v36  ;;  %2773 = vmatprep.mubr.f32.mxu1 %v749_v40  ;;  %2962 = vmatprep.mubr.f32.mxu0 %v767_v2  ;;  %v778_v8 = vsub.f32 %v3828_v42, %v777_v41 }
  0xbb   :  { %4330 = vst [vmem:[#allocation20_spill] sm:$0xff] %v3848_v19  ;;  %4331 = vst [vmem:[#allocation21_spill] sm:$0xff] %v3850_v10  ;;  %v3857_v34 = vsel %vm296_vm13, 1.0, %v4327_v63  ;;  %v3860_v57 = vsel %vm295_vm14, 1.0, %v4327_v63  ;;  %v769_v1 = vand.u32 4294901760, %v768_v30  ;;  %v787_v54 = vand.u32 4294901760, %v3850_v10 }
  0xbc   :  { %v455_v35 = vsel %vm372_vm1, %v3857_v34, 0  ;;  %v452_v36 = vsel %vm372_vm1, %v3860_v57, 0  ;;  %v797_v40 = vand.u32 4294901760, %v3848_v19  ;;  %v779_v9 = vand.u32 4294901760, %v778_v8 }
  0xbd   :  { %v3868_v37 = vsub.f32 %v455_v35, %v455_v35  ;;  %v3870_v2 = vsub.f32 %v452_v36, %v452_v36  ;;  %v262_v28 = vpop.permute.xlu1 %261  ;;  %2774 = vmatmul.mubr.f32.gmra.mrb[20].mxu1 %v759_v56  ;;  %2963 = vmatmul.mubr.f32.gmra.mrb[22].mxu0 %v777_v41  ;;  %v259_v42 = vpop.permute.xlu0 %258  ;;  %v788_v30 = vsub.f32 %v3850_v10, %v787_v54 }
  0xbe   :  { %vm298_vm15 = vcmp.eq.s32.totalorder %v3573_v27, %v262_v28  ;;  %vm297_vm0 = vcmp.eq.s32.totalorder %v3573_v27, %v259_v42  ;;  %2776 = vmatprep.mubr.f32.mxu1 %v769_v1  ;;  %2965 = vmatprep.mubr.f32.mxu0 %v787_v54  ;;  %v798_v43 = vsub.f32 %v3848_v19, %v797_v40 }
  0xbf   :  { %4332 = vst [vmem:[#allocation22_spill] sm:$0xff] %v3868_v37  ;;  %4333 = vst [vmem:[#allocation23_spill] sm:$0xff] %v3870_v2  ;;  %v3877_v35 = vsel %vm298_vm15, 1.0, %v4327_v63  ;;  %v3880_v36 = vsel %vm297_vm0, 1.0, %v4327_v63  ;;  %v789_v56 = vand.u32 4294901760, %v788_v30  ;;  %v807_v41 = vand.u32 4294901760, %v3870_v2 }
  0xc0   :  { %v461_v10 = vsel %vm372_vm1, %v3877_v35, 0  ;;  %v458_v42 = vsel %vm372_vm1, %v3880_v36, 0  ;;  %v817_v1 = vand.u32 4294901760, %v3868_v37  ;;  %v799_v47 = vand.u32 4294901760, %v798_v43 }
  0xc1   :  { %v3888_v8 = vsub.f32 %v461_v10, %v461_v10  ;;  %v3890_v54 = vsub.f32 %v458_v42, %v458_v42  ;;  %v268_v28 = vpop.permute.xlu1 %267  ;;  %2777 = vmatmul.mubr.f32.gmra.mrb[22].mxu1 %v779_v9  ;;  %2966 = vmatmul.mubr.f32.gmra.mrb[24].mxu0 %v797_v40  ;;  %v265_v19 = vpop.permute.xlu0 %264  ;;  %v808_v30 = vsub.f32 %v3870_v2, %v807_v41 }
  0xc2   :  { %vm300_vm2 = vcmp.eq.s32.totalorder %v3573_v27, %v268_v28  ;;  %vm299_vm3 = vcmp.eq.s32.totalorder %v3573_v27, %v265_v19  ;;  %2779 = vmatprep.mubr.f32.mxu1 %v789_v56  ;;  %2968 = vmatprep.mubr.f32.mxu0 %v807_v41  ;;  %v818_v11 = vsub.f32 %v3868_v37, %v817_v1 }
  0xc3   :  { %v3897_v10 = vsel %vm300_vm2, 1.0, %v4327_v63  ;;  %v3900_v42 = vsel %vm299_vm3, 1.0, %v4327_v63  ;;  %v809_v9 = vand.u32 4294901760, %v808_v30  ;;  %v827_v40 = vand.u32 4294901760, %v3890_v54 }
  0xc4   :  { %v467_v2 = vsel %vm372_vm1, %v3897_v10, 0  ;;  %v464_v27 = vsel %vm372_vm1, %v3900_v42, 0  ;;  %v837_v19 = vand.u32 4294901760, %v3888_v8  ;;  %v819_v41 = vand.u32 4294901760, %v818_v11 }
  0xc5   :  { %v3908_v43 = vsub.f32 %v467_v2, %v467_v2  ;;  %v3910_v56 = vsub.f32 %v464_v27, %v464_v27  ;;  %2780 = vmatmul.mubr.f32.gmra.mrb[24].mxu1 %v799_v47  ;;  %2969 = vmatmul.mubr.f32.gmra.mrb[26].mxu0 %v817_v1  ;;  %v828_v63 = vsub.f32 %v3890_v54, %v827_v40 }
  0xc6   :  { %2782 = vmatprep.mubr.f32.mxu1 %v809_v9  ;;  %2971 = vmatprep.mubr.f32.mxu0 %v827_v40  ;;  %v838_v37 = vsub.f32 %v3888_v8, %v837_v19 }
  0xc7   :  { %v829_v28 = vand.u32 4294901760, %v828_v63  ;;  %v847_v30 = vand.u32 4294901760, %v3910_v56  ;;  %v857_v13 = vand.u32 4294901760, %v3908_v43 }
  0xc8   :  { %v839_v47 = vand.u32 4294901760, %v838_v37 }
  0xc9   :  { %2783 = vmatmul.mubr.f32.gmra.mrb[26].mxu1 %v819_v41  ;;  %2972 = vmatmul.mubr.f32.gmra.mrb[28].mxu0 %v837_v19  ;;  %v848_v2 = vsub.f32 %v3910_v56, %v847_v30  ;;  %v858_v27 = vsub.f32 %v3908_v43, %v857_v13 }
  0xca   :  { %2785 = vmatprep.mubr.f32.mxu1 %v829_v28  ;;  %2974 = vmatprep.mubr.f32.mxu0 %v847_v30 }
  0xcb   :  { %v849_v1 = vand.u32 4294901760, %v848_v2  ;;  %v859_v11 = vand.u32 4294901760, %v858_v27 }
  0xcd   :  { %2786 = vmatmul.mubr.f32.gmra.mrb[28].mxu1 %v839_v47  ;;  %2975 = vmatmul.mubr.f32.gmra.mrb[30].mxu0 %v857_v13 }
  0xce   :  { %2788 = vmatprep.mubr.f32.mxu1 %v849_v1  ;;  %2991 = vmatprep.mubr.msk.f32.mxu0 %vm372_vm1, %v3581_v15 }
  0xd1   :  { %2789 = vmatmul.mubr.f32.gmra.mrb[30].mxu1 %v859_v11  ;;  %2992 = vmatmul.mubr.msk.f32.vlgmr.msra.gmra.mrb[0].mxu0 %vm372_vm1, %v3597_v39 }
  0xd2   :  { %2805 = vmatprep.mubr.msk.f32.mxu1 %vm372_vm1, %v3581_v15  ;;  %2994 = vmatprep.mubr.msk.f32.mxu0 %vm372_vm1, %v3578_v14 }
  0xd3   :  { %3164 = vmatpush3.bf16.msra.mxu0 %v3450_v12  ;;  %v4334_v12 = vld [vmem:[#allocation3_spill] sm:$0xff] }
  0xd4   :  { %3166 = vmatprep.subr.bf16.mxu0 %v3457_v17 }
  0xd5   :  { %2806 = vmatmul.mubr.msk.f32.vlgmr.msra.gmra.mrb[0].mxu1 %vm372_vm1, %v3597_v39  ;;  %2995 = vmatmul.mubr.msk.f32.gmra.mrb[2].mxu0 %vm372_vm1, %v3594_v38 }
  0xd6   :  { %3128 = vmatpush3.bf16.msra.mxu1 %v3565_v22  ;;  %2808 = vmatprep.mubr.msk.f32.mxu1 %vm372_vm1, %v3578_v14  ;;  %v4338_v22 = vld [vmem:[#allocation7_spill] sm:$0xff] }
  0xd7   :  { %2997 = vmatprep.mubr.msk.f32.mxu0 %vm372_vm1, %v3620_v53  ;;  %3130 = vmatprep.subr.bf16.mxu1 %v3569_v23 }
  0xd8   :  { %3168 = vmatpush3.bf16.msra.mxu0 %v3457_v17  ;;  %v4335_v17 = vld [vmem:[#allocation2_spill] sm:$0xff] }
  0xd9   :  { %2809 = vmatmul.mubr.msk.f32.gmra.mrb[2].mxu1 %vm372_vm1, %v3594_v38  ;;  %2998 = vmatmul.mubr.msk.f32.gmra.mrb[4].mxu0 %vm372_vm1, %v3617_v52 }
  0xda   :  { %2811 = vmatprep.mubr.msk.f32.mxu1 %vm372_vm1, %v3620_v53  ;;  %3000 = vmatprep.mubr.msk.f32.mxu0 %vm372_vm1, %v3645_v7 }
  0xdb   :  { %3132 = vmatpush3.bf16.msra.mxu1 %v3569_v23  ;;  %3170 = vmatprep.subr.bf16.mxu0 %v3486_v29  ;;  %v4339_v23 = vld [vmem:[#allocation6_spill] sm:$0xff] }
  0xdc   :  { %3134 = vmatprep.subr.bf16.mxu1 %v3571_v25  ;;  %3172 = vmatpush3.bf16.msra.mxu0 %v3486_v29  ;;  %v4336_v29 = vld [vmem:[#allocation5_spill] sm:$0xff] }
  0xdd   :  { %2812 = vmatmul.mubr.msk.f32.gmra.mrb[4].mxu1 %vm372_vm1, %v3617_v52  ;;  %3001 = vmatmul.mubr.msk.f32.gmra.mrb[6].mxu0 %vm372_vm1, %v3642_v6 }
  0xde   :  { %2814 = vmatprep.mubr.msk.f32.mxu1 %vm372_vm1, %v3645_v7  ;;  %3003 = vmatprep.mubr.msk.f32.mxu0 %vm372_vm1, %v3667_v24 }
  0xdf   :  { %3136 = vmatpush3.bf16.msra.mxu1 %v3571_v25  ;;  %3051 = vmatprep.subr.mxu0 %v3518_v45  ;;  %v4340_v25 = vld [vmem:[#allocation9_spill] sm:$0xff] }
  0xe0   :  { %2865 = vmatprep.subr.mxu1 %v3614_v51  ;;  %3052 = vmatpush3.msra.mxu0 %v3518_v45  ;;  %v4337_v45 = vld [vmem:[#allocation4_spill] sm:$0xff] }
  0xe1   :  { %2815 = vmatmul.mubr.msk.f32.gmra.mrb[6].mxu1 %vm372_vm1, %v3642_v6  ;;  %3004 = vmatmul.mubr.msk.f32.gmra.mrb[8].mxu0 %vm372_vm1, %v3664_v18 }
  0xe2   :  { %2817 = vmatprep.mubr.msk.f32.mxu1 %vm372_vm1, %v3667_v24  ;;  %3006 = vmatprep.mubr.msk.f32.mxu0 %vm372_vm1, %v3691_v59 }
  0xe3   :  { %2866 = vmatpush3.msra.mxu1 %v3614_v51  ;;  %v4349_v51 = vld [vmem:[#allocation16_spill] sm:$0xff] }
  0xe5   :  { %2818 = vmatmul.mubr.msk.f32.gmra.mrb[8].mxu1 %vm372_vm1, %v3664_v18  ;;  %3007 = vmatmul.mubr.msk.f32.gmra.mrb[10].mxu0 %vm372_vm1, %v3688_v58 }
  0xe6   :  { %2820 = vmatprep.mubr.msk.f32.mxu1 %vm372_vm1, %v3691_v59  ;;  %3009 = vmatprep.mubr.msk.f32.mxu0 %vm372_vm1, %v3715_v20 }
  0xe9   :  { %2821 = vmatmul.mubr.msk.f32.gmra.mrb[10].mxu1 %vm372_vm1, %v3688_v58  ;;  %3010 = vmatmul.mubr.msk.f32.gmra.mrb[12].mxu0 %vm372_vm1, %v3712_v4 }
  0xea   :  { %2823 = vmatprep.mubr.msk.f32.mxu1 %vm372_vm1, %v3715_v20  ;;  %3012 = vmatprep.mubr.msk.f32.mxu0 %vm372_vm1, %v3738_v50 }
  0xed   :  { %2824 = vmatmul.mubr.msk.f32.gmra.mrb[12].mxu1 %vm372_vm1, %v3712_v4  ;;  %3013 = vmatmul.mubr.msk.f32.gmra.mrb[14].mxu0 %vm372_vm1, %v3735_v5 }
  0xee   :  { %2826 = vmatprep.mubr.msk.f32.mxu1 %vm372_vm1, %v3738_v50  ;;  %3015 = vmatprep.mubr.msk.f32.mxu0 %vm372_vm1, %v3760_v16 }
  0xf1   :  { %2827 = vmatmul.mubr.msk.f32.gmra.mrb[14].mxu1 %vm372_vm1, %v3735_v5  ;;  %3016 = vmatmul.mubr.msk.f32.gmra.mrb[16].mxu0 %vm372_vm1, %v3757_v0 }
  0xf2   :  { %2829 = vmatprep.mubr.msk.f32.mxu1 %vm372_vm1, %v3760_v16  ;;  %3018 = vmatprep.mubr.msk.f32.mxu0 %vm372_vm1, %v3780_v60 }
  0xf5   :  { %2830 = vmatmul.mubr.msk.f32.gmra.mrb[16].mxu1 %vm372_vm1, %v3757_v0  ;;  %3019 = vmatmul.mubr.msk.f32.gmra.mrb[18].mxu0 %vm372_vm1, %v3777_v55 }
  0xf6   :  { %2832 = vmatprep.mubr.msk.f32.mxu1 %vm372_vm1, %v3780_v60  ;;  %3021 = vmatprep.mubr.msk.f32.mxu0 %vm372_vm1, %v3800_v3 }
  0xf9   :  { %2833 = vmatmul.mubr.msk.f32.gmra.mrb[18].mxu1 %vm372_vm1, %v3777_v55  ;;  %3022 = vmatmul.mubr.msk.f32.gmra.mrb[20].mxu0 %vm372_vm1, %v3797_v49 }
  0xfa   :  { %2835 = vmatprep.mubr.msk.f32.mxu1 %vm372_vm1, %v3800_v3  ;;  %3024 = vmatprep.mubr.msk.f32.mxu0 %vm372_vm1, %v3820_v26 }
  0xfd   :  { %2836 = vmatmul.mubr.msk.f32.gmra.mrb[20].mxu1 %vm372_vm1, %v3797_v49  ;;  %3025 = vmatmul.mubr.msk.f32.gmra.mrb[22].mxu0 %vm372_vm1, %v3817_v48 }
  0xfe   :  { %2838 = vmatprep.mubr.msk.f32.mxu1 %vm372_vm1, %v3820_v26  ;;  %3027 = vmatprep.mubr.msk.f32.mxu0 %vm372_vm1, %v3840_v31 }
 0x101   :  { %2839 = vmatmul.mubr.msk.f32.gmra.mrb[22].mxu1 %vm372_vm1, %v3817_v48  ;;  %3028 = vmatmul.mubr.msk.f32.gmra.mrb[24].mxu0 %vm372_vm1, %v3837_v21 }
 0x102   :  { %2841 = vmatprep.mubr.msk.f32.mxu1 %vm372_vm1, %v3840_v31  ;;  %3030 = vmatprep.mubr.msk.f32.mxu0 %vm372_vm1, %v3860_v57 }
 0x105   :  { %2842 = vmatmul.mubr.msk.f32.gmra.mrb[24].mxu1 %vm372_vm1, %v3837_v21  ;;  %3031 = vmatmul.mubr.msk.f32.gmra.mrb[26].mxu0 %vm372_vm1, %v3857_v34 }
 0x106   :  { %2844 = vmatprep.mubr.msk.f32.mxu1 %vm372_vm1, %v3860_v57  ;;  %3033 = vmatprep.mubr.msk.f32.mxu0 %vm372_vm1, %v3880_v36 }
 0x109   :  { %2845 = vmatmul.mubr.msk.f32.gmra.mrb[26].mxu1 %vm372_vm1, %v3857_v34  ;;  %3034 = vmatmul.mubr.msk.f32.gmra.mrb[28].mxu0 %vm372_vm1, %v3877_v35 }
 0x10a   :  { %2847 = vmatprep.mubr.msk.f32.mxu1 %vm372_vm1, %v3880_v36  ;;  %3036 = vmatprep.mubr.msk.f32.mxu0 %vm372_vm1, %v3900_v42 }
 0x10d   :  { %2848 = vmatmul.mubr.msk.f32.gmra.mrb[28].mxu1 %vm372_vm1, %v3877_v35  ;;  %3037 = vmatmul.mubr.msk.f32.gmra.mrb[30].mxu0 %vm372_vm1, %v3897_v10 }
 0x10e   :  { %2850 = vmatprep.mubr.msk.f32.mxu1 %vm372_vm1, %v3900_v42  ;;  %3053 = vmatprep.mubr.msk.f32.mxu0 %vm372_vm1, %v3581_v15  ;;  %v4342_v15 = vld [vmem:[#allocation11_spill] sm:$0xff] }
 0x111   :  { %2851 = vmatmul.mubr.msk.f32.gmra.mrb[30].mxu1 %vm372_vm1, %v3897_v10  ;;  %3054 = vmatmul.mubr.msk.f32.vlgmr.msra.gmra.mrb[0].mxu0 %vm372_vm1, %v3597_v39  ;;  %v4346_v39 = vld [vmem:[#allocation15_spill] sm:$0xff] }
 0x112   :  { %2867 = vmatprep.mubr.f32.mxu1 %v3589_v33  ;;  %3056 = vmatprep.mubr.msk.f32.mxu0 %vm372_vm1, %v3578_v14  ;;  %v4341_v14 = vld [vmem:[#allocation8_spill] sm:$0xff]  ;;  %v4344_v33 = vld [vmem:[#allocation13_spill] sm:$0xff] }
 0x115   :  { %2868 = vmatmul.mubr.f32.vlgmr.msra.gmra.mrb[0].mxu1 %v3607_v46  ;;  %3057 = vmatmul.mubr.msk.f32.gmra.mrb[2].mxu0 %vm372_vm1, %v3594_v38  ;;  %v4345_v38 = vld [vmem:[#allocation12_spill] sm:$0xff]  ;;  %v4348_v46 = vld [vmem:[#allocation17_spill] sm:$0xff] }
 0x116   :  { %2870 = vmatprep.mubr.f32.mxu1 %v3587_v32  ;;  %3059 = vmatprep.mubr.msk.f32.mxu0 %vm372_vm1, %v3620_v53  ;;  %v4343_v32 = vld [vmem:[#allocation10_spill] sm:$0xff] }
 0x117   :  { %v4351_v53 = vld [vmem:[#allocation18_spill] sm:$0xff] }
 0x119   :  { %2871 = vmatmul.mubr.f32.gmra.mrb[2].mxu1 %v3605_v44  ;;  %3060 = vmatmul.mubr.msk.f32.gmra.mrb[4].mxu0 %vm372_vm1, %v3617_v52  ;;  %v4347_v44 = vld [vmem:[#allocation14_spill] sm:$0xff]  ;;  %v4350_v52 = vld [vmem:[#allocation19_spill] sm:$0xff] }
 0x11a   :  { %2873 = vmatprep.mubr.f32.mxu1 %v3631_v62  ;;  %3062 = vmatprep.mubr.msk.f32.mxu0 %vm372_vm1, %v3645_v7  ;;  %v4353_v62 = vld [vmem:[#allocation20_spill] sm:$0xff]  ;;  %v4355_v7 = vld [vmem:[#allocation22_spill] sm:$0xff] }
 0x11d   :  { %2874 = vmatmul.mubr.f32.gmra.mrb[4].mxu1 %v3629_v61  ;;  %3063 = vmatmul.mubr.msk.f32.gmra.mrb[6].mxu0 %vm372_vm1, %v3642_v6  ;;  %v4352_v61 = vld [vmem:[#allocation21_spill] sm:$0xff]  ;;  %v4354_v6 = vld [vmem:[#allocation23_spill] sm:$0xff] }
 0x11e   :  { %2876 = vmatprep.mubr.f32.mxu1 %v4334_v12  ;;  %3065 = vmatprep.mubr.msk.f32.mxu0 %vm372_vm1, %v3667_v24 }
 0x121   :  { %2877 = vmatmul.mubr.f32.gmra.mrb[6].mxu1 %v4335_v17  ;;  %3066 = vmatmul.mubr.msk.f32.gmra.mrb[8].mxu0 %vm372_vm1, %v3664_v18 }
 0x122   :  { %2879 = vmatprep.mubr.f32.mxu1 %v4336_v29  ;;  %3068 = vmatprep.mubr.msk.f32.mxu0 %vm372_vm1, %v3691_v59 }
 0x125   :  { %2880 = vmatmul.mubr.f32.gmra.mrb[8].mxu1 %v4337_v45  ;;  %3069 = vmatmul.mubr.msk.f32.gmra.mrb[10].mxu0 %vm372_vm1, %v3688_v58 }
 0x126   :  { %2882 = vmatprep.mubr.f32.mxu1 %v4338_v22  ;;  %3071 = vmatprep.mubr.msk.f32.mxu0 %vm372_vm1, %v3715_v20 }
 0x129   :  { %2883 = vmatmul.mubr.f32.gmra.mrb[10].mxu1 %v4339_v23  ;;  %3072 = vmatmul.mubr.msk.f32.gmra.mrb[12].mxu0 %vm372_vm1, %v3712_v4 }
 0x12a   :  { %2885 = vmatprep.mubr.f32.mxu1 %v4340_v25  ;;  %3074 = vmatprep.mubr.msk.f32.mxu0 %vm372_vm1, %v3738_v50 }
 0x12d   :  { %2886 = vmatmul.mubr.f32.gmra.mrb[12].mxu1 %v4341_v14  ;;  %3075 = vmatmul.mubr.msk.f32.gmra.mrb[14].mxu0 %vm372_vm1, %v3735_v5 }
 0x12e   :  { %2888 = vmatprep.mubr.f32.mxu1 %v4342_v15  ;;  %3077 = vmatprep.mubr.msk.f32.mxu0 %vm372_vm1, %v3760_v16 }
 0x131   :  { %2889 = vmatmul.mubr.f32.gmra.mrb[14].mxu1 %v4343_v32  ;;  %3078 = vmatmul.mubr.msk.f32.gmra.mrb[16].mxu0 %vm372_vm1, %v3757_v0 }
 0x132   :  { %2891 = vmatprep.mubr.f32.mxu1 %v4344_v33  ;;  %3080 = vmatprep.mubr.msk.f32.mxu0 %vm372_vm1, %v3780_v60 }
 0x135   :  { %2892 = vmatmul.mubr.f32.gmra.mrb[16].mxu1 %v4345_v38  ;;  %3081 = vmatmul.mubr.msk.f32.gmra.mrb[18].mxu0 %vm372_vm1, %v3777_v55 }
 0x136   :  { %2894 = vmatprep.mubr.f32.mxu1 %v4346_v39  ;;  %3083 = vmatprep.mubr.msk.f32.mxu0 %vm372_vm1, %v3800_v3 }
 0x139   :  { %2895 = vmatmul.mubr.f32.gmra.mrb[18].mxu1 %v4347_v44  ;;  %3084 = vmatmul.mubr.msk.f32.gmra.mrb[20].mxu0 %vm372_vm1, %v3797_v49 }
 0x13a   :  { %2897 = vmatprep.mubr.f32.mxu1 %v4348_v46  ;;  %3086 = vmatprep.mubr.msk.f32.mxu0 %vm372_vm1, %v3820_v26 }
 0x13d   :  { %2898 = vmatmul.mubr.f32.gmra.mrb[20].mxu1 %v4349_v51  ;;  %3087 = vmatmul.mubr.msk.f32.gmra.mrb[22].mxu0 %vm372_vm1, %v3817_v48 }
 0x13e   :  { %2900 = vmatprep.mubr.f32.mxu1 %v4350_v52  ;;  %3089 = vmatprep.mubr.msk.f32.mxu0 %vm372_vm1, %v3840_v31 }
 0x141   :  { %2901 = vmatmul.mubr.f32.gmra.mrb[22].mxu1 %v4351_v53  ;;  %3090 = vmatmul.mubr.msk.f32.gmra.mrb[24].mxu0 %vm372_vm1, %v3837_v21 }
 0x142   :  { %2903 = vmatprep.mubr.f32.mxu1 %v4352_v61  ;;  %3092 = vmatprep.mubr.msk.f32.mxu0 %vm372_vm1, %v3860_v57 }
 0x145   :  { %2904 = vmatmul.mubr.f32.gmra.mrb[24].mxu1 %v4353_v62  ;;  %3093 = vmatmul.mubr.msk.f32.gmra.mrb[26].mxu0 %vm372_vm1, %v3857_v34 }
 0x146   :  { %2906 = vmatprep.mubr.f32.mxu1 %v4354_v6  ;;  %3095 = vmatprep.mubr.msk.f32.mxu0 %vm372_vm1, %v3880_v36 }
 0x149   :  { %2907 = vmatmul.mubr.f32.gmra.mrb[26].mxu1 %v4355_v7  ;;  %3096 = vmatmul.mubr.msk.f32.gmra.mrb[28].mxu0 %vm372_vm1, %v3877_v35 }
 0x14a   :  { %2909 = vmatprep.mubr.f32.mxu1 %v3890_v54  ;;  %3098 = vmatprep.mubr.msk.f32.mxu0 %vm372_vm1, %v3900_v42 }
 0x14d   :  { %2910 = vmatmul.mubr.f32.gmra.mrb[28].mxu1 %v3888_v8  ;;  %3099 = vmatmul.mubr.msk.f32.gmra.mrb[30].mxu0 %vm372_vm1, %v3897_v10 }
 0x14e   :  { %2912 = vmatprep.mubr.f32.mxu1 %v3910_v56 }
 0x151   :  { %2913 = vmatmul.mubr.f32.gmra.mrb[30].mxu1 %v3908_v43 }
 0x1e4   :  { %v3055_v13 = vpop.f32.mrb[0].mxu0 }
 0x1e5   :  { %v2140_v18 = vpop.f32.mrb[1].mxu0 }
 0x1e8   :  { %v2869_v24 = vpop.f32.mrb[0].mxu1  ;;  %v3058_v58 = vpop.f32.mrb[2].mxu0 }
 0x1e9   :  { %v3173_v59 = vadd.f32 %v3055_v13, %v2869_v24  ;;  %v1239_v4 = vpop.f32.mrb[1].mxu1  ;;  %v2152_v20 = vpop.f32.mrb[3].mxu0 }
 0x1ea   :  { %v3174_v5 = vadd.f32 %v2140_v18, %v1239_v4 }
 0x1eb   :  { %2332 = vst.msk [vmem:[%s4286_s2 + $0x8] sm:$0xff] %vm2330_vm4, %v3173_v59 }
 0x1ec   :  { %2331 = vst.msk [vmem:[%s4286_s2] sm:$0xff] %vm2330_vm4, %v3174_v5  ;;  %v2872_v50 = vpop.f32.mrb[2].mxu1  ;;  %v3061_v0 = vpop.f32.mrb[4].mxu0 }
 0x1ed   :  { %v3175_v16 = vadd.f32 %v3058_v58, %v2872_v50  ;;  %v1253_v55 = vpop.f32.mrb[3].mxu1  ;;  %v2164_v60 = vpop.f32.mrb[5].mxu0 }
 0x1ee   :  { %v3176_v49 = vadd.f32 %v2152_v20, %v1253_v55 }
 0x1ef   :  { %2334 = vst.msk [vmem:[%s4286_s2 + $0x18] sm:$0xff] %vm2330_vm4, %v3175_v16 }
 0x1f0   :  { %2333 = vst.msk [vmem:[%s4286_s2 + $0x10] sm:$0xff] %vm2330_vm4, %v3176_v49  ;;  %v2875_v3 = vpop.f32.mrb[4].mxu1  ;;  %v3064_v48 = vpop.f32.mrb[6].mxu0 }
 0x1f1   :  { %v3177_v26 = vadd.f32 %v3061_v0, %v2875_v3  ;;  %v1267_v21 = vpop.f32.mrb[5].mxu1  ;;  %v2176_v31 = vpop.f32.mrb[7].mxu0 }
 0x1f2   :  { %v3178_v34 = vadd.f32 %v2164_v60, %v1267_v21 }
 0x1f3   :  { %2336 = vst.msk [vmem:[%s4286_s2 + $0x28] sm:$0xff] %vm2330_vm4, %v3177_v26 }
 0x1f4   :  { %2335 = vst.msk [vmem:[%s4286_s2 + $0x20] sm:$0xff] %vm2330_vm4, %v3178_v34  ;;  %v2878_v57 = vpop.f32.mrb[6].mxu1  ;;  %v3067_v37 = vpop.f32.mrb[8].mxu0 }
 0x1f5   :  { %v3179_v35 = vadd.f32 %v3064_v48, %v2878_v57  ;;  %v1281_v36 = vpop.f32.mrb[7].mxu1  ;;  %v2188_v8 = vpop.f32.mrb[9].mxu0 }
 0x1f6   :  { %v3180_v54 = vadd.f32 %v2176_v31, %v1281_v36 }
 0x1f7   :  { %2338 = vst.msk [vmem:[%s4286_s2 + $0x38] sm:$0xff] %vm2330_vm4, %v3179_v35 }
 0x1f8   :  { %2337 = vst.msk [vmem:[%s4286_s2 + $0x30] sm:$0xff] %vm2330_vm4, %v3180_v54  ;;  %v2881_v10 = vpop.f32.mrb[8].mxu1  ;;  %v3070_v42 = vpop.f32.mrb[10].mxu0 }
 0x1f9   :  { %v3181_v9 = vadd.f32 %v3067_v37, %v2881_v10  ;;  %v1295_v40 = vpop.f32.mrb[9].mxu1  ;;  %v2200_v19 = vpop.f32.mrb[11].mxu0 }
 0x1fa   :  { %v3182_v43 = vadd.f32 %v2188_v8, %v1295_v40 }
 0x1fb   :  { %2340 = vst.msk [vmem:[%s4286_s2 + $0x48] sm:$0xff] %vm2330_vm4, %v3181_v9 }
 0x1fc   :  { %2339 = vst.msk [vmem:[%s4286_s2 + $0x40] sm:$0xff] %vm2330_vm4, %v3182_v43  ;;  %v2884_v56 = vpop.f32.mrb[10].mxu1  ;;  %v3073_v63 = vpop.f32.mrb[12].mxu0 }
 0x1fd   :  { %v3183_v41 = vadd.f32 %v3070_v42, %v2884_v56  ;;  %v1309_v28 = vpop.f32.mrb[11].mxu1  ;;  %v2212_v30 = vpop.f32.mrb[13].mxu0 }
 0x1fe   :  { %v3184_v2 = vadd.f32 %v2200_v19, %v1309_v28 }
 0x1ff   :  { %2342 = vst.msk [vmem:[%s4286_s2 + $0x58] sm:$0xff] %vm2330_vm4, %v3183_v41 }
 0x200   :  { %2341 = vst.msk [vmem:[%s4286_s2 + $0x50] sm:$0xff] %vm2330_vm4, %v3184_v2  ;;  %v2887_v47 = vpop.f32.mrb[12].mxu1  ;;  %v3076_v1 = vpop.f32.mrb[14].mxu0 }
 0x201   :  { %v3185_v27 = vadd.f32 %v3073_v63, %v2887_v47  ;;  %v1323_v11 = vpop.f32.mrb[13].mxu1  ;;  %v2224_v12 = vpop.f32.mrb[15].mxu0 }
 0x202   :  { %v3186_v17 = vadd.f32 %v2212_v30, %v1323_v11 }
 0x203   :  { %2344 = vst.msk [vmem:[%s4286_s2 + $0x68] sm:$0xff] %vm2330_vm4, %v3185_v27 }
 0x204   :  { %2343 = vst.msk [vmem:[%s4286_s2 + $0x60] sm:$0xff] %vm2330_vm4, %v3186_v17  ;;  %v2890_v29 = vpop.f32.mrb[14].mxu1  ;;  %v3079_v45 = vpop.f32.mrb[16].mxu0 }
 0x205   :  { %v3187_v22 = vadd.f32 %v3076_v1, %v2890_v29  ;;  %v1337_v23 = vpop.f32.mrb[15].mxu1  ;;  %v2236_v25 = vpop.f32.mrb[17].mxu0 }
 0x206   :  { %v3188_v14 = vadd.f32 %v2224_v12, %v1337_v23 }
 0x207   :  { %2346 = vst.msk [vmem:[%s4286_s2 + $0x78] sm:$0xff] %vm2330_vm4, %v3187_v22 }
 0x208   :  { %2345 = vst.msk [vmem:[%s4286_s2 + $0x70] sm:$0xff] %vm2330_vm4, %v3188_v14  ;;  %v2893_v15 = vpop.f32.mrb[16].mxu1  ;;  %v3082_v32 = vpop.f32.mrb[18].mxu0 }
 0x209   :  { %v3189_v33 = vadd.f32 %v3079_v45, %v2893_v15  ;;  %v1351_v38 = vpop.f32.mrb[17].mxu1  ;;  %v2248_v39 = vpop.f32.mrb[19].mxu0 }
 0x20a   :  { %v3190_v44 = vadd.f32 %v2236_v25, %v1351_v38 }
 0x20b   :  { %2348 = vst.msk [vmem:[%s4286_s2 + $0x88] sm:$0xff] %vm2330_vm4, %v3189_v33 }
 0x20c   :  { %2347 = vst.msk [vmem:[%s4286_s2 + $0x80] sm:$0xff] %vm2330_vm4, %v3190_v44  ;;  %v2896_v46 = vpop.f32.mrb[18].mxu1  ;;  %v3085_v51 = vpop.f32.mrb[20].mxu0 }
 0x20d   :  { %v3191_v52 = vadd.f32 %v3082_v32, %v2896_v46  ;;  %v1365_v53 = vpop.f32.mrb[19].mxu1  ;;  %v2260_v61 = vpop.f32.mrb[21].mxu0 }
 0x20e   :  { %v3192_v62 = vadd.f32 %v2248_v39, %v1365_v53 }
 0x20f   :  { %2350 = vst.msk [vmem:[%s4286_s2 + $0x98] sm:$0xff] %vm2330_vm4, %v3191_v52 }
 0x210   :  { %2349 = vst.msk [vmem:[%s4286_s2 + $0x90] sm:$0xff] %vm2330_vm4, %v3192_v62  ;;  %v2899_v6 = vpop.f32.mrb[20].mxu1  ;;  %v3088_v7 = vpop.f32.mrb[22].mxu0 }
 0x211   :  { %v3193_v13 = vadd.f32 %v3085_v51, %v2899_v6  ;;  %v1379_v18 = vpop.f32.mrb[21].mxu1  ;;  %v2272_v24 = vpop.f32.mrb[23].mxu0 }
 0x212   :  { %v3194_v58 = vadd.f32 %v2260_v61, %v1379_v18 }
 0x213   :  { %2352 = vst.msk [vmem:[%s4286_s2 + $0xa8] sm:$0xff] %vm2330_vm4, %v3193_v13 }
 0x214   :  { %2351 = vst.msk [vmem:[%s4286_s2 + $0xa0] sm:$0xff] %vm2330_vm4, %v3194_v58  ;;  %v2902_v59 = vpop.f32.mrb[22].mxu1  ;;  %v3091_v4 = vpop.f32.mrb[24].mxu0 }
 0x215   :  { %v3195_v20 = vadd.f32 %v3088_v7, %v2902_v59  ;;  %v1393_v5 = vpop.f32.mrb[23].mxu1  ;;  %v2284_v50 = vpop.f32.mrb[25].mxu0 }
 0x216   :  { %v3196_v0 = vadd.f32 %v2272_v24, %v1393_v5 }
 0x217   :  { %2354 = vst.msk [vmem:[%s4286_s2 + $0xb8] sm:$0xff] %vm2330_vm4, %v3195_v20 }
 0x218   :  { %2353 = vst.msk [vmem:[%s4286_s2 + $0xb0] sm:$0xff] %vm2330_vm4, %v3196_v0  ;;  %v2905_v16 = vpop.f32.mrb[24].mxu1  ;;  %v3094_v55 = vpop.f32.mrb[26].mxu0 }
 0x219   :  { %v3197_v60 = vadd.f32 %v3091_v4, %v2905_v16  ;;  %v1407_v49 = vpop.f32.mrb[25].mxu1  ;;  %v2296_v3 = vpop.f32.mrb[27].mxu0 }
 0x21a   :  { %v3198_v48 = vadd.f32 %v2284_v50, %v1407_v49 }
 0x21b   :  { %2356 = vst.msk [vmem:[%s4286_s2 + $0xc8] sm:$0xff] %vm2330_vm4, %v3197_v60 }
 0x21c   :  { %2355 = vst.msk [vmem:[%s4286_s2 + $0xc0] sm:$0xff] %vm2330_vm4, %v3198_v48  ;;  %v2908_v26 = vpop.f32.mrb[26].mxu1  ;;  %v3097_v21 = vpop.f32.mrb[28].mxu0 }
 0x21d   :  { %v3199_v31 = vadd.f32 %v3094_v55, %v2908_v26  ;;  %v1421_v34 = vpop.f32.mrb[27].mxu1  ;;  %v2308_v57 = vpop.f32.mrb[29].mxu0 }
 0x21e   :  { %v3200_v37 = vadd.f32 %v2296_v3, %v1421_v34 }
 0x21f   :  { %2358 = vst.msk [vmem:[%s4286_s2 + $0xd8] sm:$0xff] %vm2330_vm4, %v3199_v31 }
 0x220   :  { %2357 = vst.msk [vmem:[%s4286_s2 + $0xd0] sm:$0xff] %vm2330_vm4, %v3200_v37  ;;  %v2911_v35 = vpop.f32.mrb[28].mxu1  ;;  %v3100_v36 = vpop.f32.mrb[30].mxu0 }
 0x221   :  { %v3201_v8 = vadd.f32 %v3097_v21, %v2911_v35  ;;  %v1435_v54 = vpop.f32.mrb[29].mxu1  ;;  %v2320_v10 = vpop.f32.mrb[31].mxu0 }
 0x222   :  { %v3202_v42 = vadd.f32 %v2308_v57, %v1435_v54 }
 0x223   :  { %2360 = vst.msk [vmem:[%s4286_s2 + $0xe8] sm:$0xff] %vm2330_vm4, %v3201_v8 }
 0x224   :  { %2359 = vst.msk [vmem:[%s4286_s2 + $0xe0] sm:$0xff] %vm2330_vm4, %v3202_v42  ;;  %v2914_v9 = vpop.f32.mrb[30].mxu1 }
 0x225   :  { %v3203_v40 = vadd.f32 %v3100_v36, %v2914_v9  ;;  %v1449_v19 = vpop.f32.mrb[31].mxu1 }
 0x226   :  { %v3204_v43 = vadd.f32 %v2320_v10, %v1449_v19 }
 0x227   :  { %2362 = vst.msk [vmem:[%s4286_s2 + $0xf8] sm:$0xff] %vm2330_vm4, %v3203_v40 }
 0x228   :  { %2361 = vst.msk [vmem:[%s4286_s2 + $0xf0] sm:$0xff] %vm2330_vm4, %v3204_v43 }

</bundles_post_ra>
